<compile_context>
chip_gen: v7x
topology: tpu7x:2x2x1
jax: 0.10.0
libtpu: 0.0.40
codegen_flags: <defaults>
</compile_context>

<pallas_src>
import jax
import jax.numpy as jnp
from jax.experimental import pallas as pl

SIGNAL = 24      # LSTM input_size (and the trailing dim of the .view)
BATCH = 24       # the "24" in x.view(1, 24, signal_shape)
HID = 20         # LSTM hidden size per direction
GATE_PAD = 128   # each packed gate block (2*HID = 40 useful lanes) padded to one vreg lane width
NGATES = 3       # i, g, o  (f is dropped: it multiplies the zero initial cell state)
DENSE_OUT = 20   # Linear(40, 20)


def encoder_kernel(x_ref, wg_ref, bg_ref, wd_ref, bd_ref, o_ref):
    # x_ref : (BATCH, SIGNAL)               f32
    # wg_ref: (SIGNAL, NGATES*GATE_PAD)     f32  packed, lane-padded [i | g | o] gate weights (both dirs)
    # bg_ref: (1, NGATES*GATE_PAD)          f32  packed gate biases (b_ih + b_hh), lane-padded with zeros
    # wd_ref: (GATE_PAD, DENSE_OUT)         f32  dense.weight.T zero-padded from 40 to 128 rows
    # bd_ref: (1, DENSE_OUT)                f32
    # o_ref : (BATCH, DENSE_OUT)            f32
    x = x_ref[...]
    gates = jnp.dot(x, wg_ref[...], preferred_element_type=jnp.float32) + bg_ref[...]
    i = jax.nn.sigmoid(gates[:, 0 * GATE_PAD:1 * GATE_PAD])
    g = jnp.tanh(gates[:, 1 * GATE_PAD:2 * GATE_PAD])
    o = jax.nn.sigmoid(gates[:, 2 * GATE_PAD:3 * GATE_PAD])
    # c = f*c0 + i*g with c0 == 0  ->  c = i*g ;  h = o * tanh(c)
    h = o * jnp.tanh(i * g)          # (BATCH, GATE_PAD); lanes 40:128 are exactly 0
    y = jnp.dot(h, wd_ref[...], preferred_element_type=jnp.float32) + bd_ref[...]
    o_ref[...] = y.astype(o_ref.dtype)


def prepare_encoder_params(params):
    """One-time packing of nn.LSTM / nn.Linear weights into the kernel layout.

    params (PyTorch shapes):
      w_ih   (80,24)  w_hh   (80,20)  b_ih   (80,)  b_hh   (80,)    forward direction
      w_ih_r (80,24)  w_hh_r (80,20)  b_ih_r (80,)  b_hh_r (80,)    reverse direction
      w_dense (20,40) b_dense (20,)
    w_hh / w_hh_r are unused: the single timestep sees h0 == 0.
    """
    def gate_slices(w_ih, b_ih, b_hh):
        w_t = jnp.asarray(w_ih, jnp.float32).T                      # (24, 80)
        b = jnp.asarray(b_ih, jnp.float32) + jnp.asarray(b_hh, jnp.float32)
        idx = {"i": 0, "g": 2, "o": 3}                              # PyTorch order [i, f, g, o]; f dropped
        w = {k: w_t[:, v * HID:(v + 1) * HID] for k, v in idx.items()}
        bb = {k: b[v * HID:(v + 1) * HID] for k, v in idx.items()}
        return w, bb

    wf, bf = gate_slices(params["w_ih"], params["b_ih"], params["b_hh"])
    wr, br = gate_slices(params["w_ih_r"], params["b_ih_r"], params["b_hh_r"])

    w_blocks, b_blocks = [], []
    for k in ("i", "g", "o"):
        wb = jnp.zeros((SIGNAL, GATE_PAD), jnp.float32)
        wb = wb.at[:, 0:HID].set(wf[k]).at[:, HID:2 * HID].set(wr[k])
        bb = jnp.zeros((GATE_PAD,), jnp.float32)
        bb = bb.at[0:HID].set(bf[k]).at[HID:2 * HID].set(br[k])
        w_blocks.append(wb)
        b_blocks.append(bb)
    wg = jnp.concatenate(w_blocks, axis=1)                           # (24, 384)
    bg = jnp.concatenate(b_blocks, axis=0).reshape(1, NGATES * GATE_PAD)

    wd = jnp.zeros((GATE_PAD, DENSE_OUT), jnp.float32)
    wd = wd.at[0:2 * HID, :].set(jnp.asarray(params["w_dense"], jnp.float32).T)
    bd = jnp.asarray(params["b_dense"], jnp.float32).reshape(1, DENSE_OUT)
    return wg, bg, wd, bd


def _full_spec(shape):
    # block == full array -> single grid point, everything resident in VMEM
    return pl.BlockSpec(shape, lambda: tuple(0 for _ in shape))


@jax.jit
def encoder_forward(x, wg, bg, wd, bd):
    """x: any array with 1*24*SIGNAL elements (matches torch .view). Returns (1, 24, 20)."""
    x2d = jnp.reshape(x, (BATCH, SIGNAL)).astype(jnp.float32)
    out = pl.pallas_call(
        encoder_kernel,
        out_shape=jax.ShapeDtypeStruct((BATCH, DENSE_OUT), jnp.float32),
        in_specs=[
            _full_spec((BATCH, SIGNAL)),
            _full_spec((SIGNAL, NGATES * GATE_PAD)),
            _full_spec((1, NGATES * GATE_PAD)),
            _full_spec((GATE_PAD, DENSE_OUT)),
            _full_spec((1, DENSE_OUT)),
        ],
        out_specs=_full_spec((BATCH, DENSE_OUT)),
    )(x2d, wg, bg, wd, bd)
    return jnp.reshape(out, (1, BATCH, DENSE_OUT))


def init_params(key):
    """Deterministic synthetic parameters with nn.LSTM / nn.Linear shapes."""
    ks = jax.random.split(key, 10)
    u = lambda k, shape: jax.random.uniform(k, shape, jnp.float32, -0.2, 0.2)
    return {
        "w_ih": u(ks[0], (4 * HID, SIGNAL)),
        "w_hh": u(ks[1], (4 * HID, HID)),
        "b_ih": u(ks[2], (4 * HID,)),
        "b_hh": u(ks[3], (4 * HID,)),
        "w_ih_r": u(ks[4], (4 * HID, SIGNAL)),
        "w_hh_r": u(ks[5], (4 * HID, HID)),
        "b_ih_r": u(ks[6], (4 * HID,)),
        "b_hh_r": u(ks[7], (4 * HID,)),
        "w_dense": u(ks[8], (DENSE_OUT, 2 * HID)),
        "b_dense": u(ks[9], (DENSE_OUT,)),
    }


def reference_forward(x, params):
    """Pure-JAX mirror of the PyTorch module (full LSTM-cell math incl. forget gate)."""
    x2d = jnp.reshape(x, (BATCH, SIGNAL)).astype(jnp.float32)

    def direction(w_ih, b_ih, b_hh):
        gates = x2d @ jnp.asarray(w_ih, jnp.float32).T + b_ih + b_hh   # h0 == 0 -> no w_hh term
        i = jax.nn.sigmoid(gates[:, 0 * HID:1 * HID])
        f = jax.nn.sigmoid(gates[:, 1 * HID:2 * HID])
        g = jnp.tanh(gates[:, 2 * HID:3 * HID])
        o = jax.nn.sigmoid(gates[:, 3 * HID:4 * HID])
        c = f * 0.0 + i * g                                             # c0 == 0
        return o * jnp.tanh(c)

    h_f = direction(params["w_ih"], params["b_ih"], params["b_hh"])
    h_r = direction(params["w_ih_r"], params["b_ih_r"], params["b_hh_r"])
    h = jnp.concatenate([h_f, h_r], axis=-1)                            # (24, 40)
    y = h @ jnp.asarray(params["w_dense"], jnp.float32).T + params["b_dense"]
    return jnp.reshape(y, (1, BATCH, DENSE_OUT))


if __name__ == "__main__":
    key = jax.random.PRNGKey(0)
    kx, kp = jax.random.split(key)

    # Input consistent with x.view(1, 24, signal_shape): 1*24*24 elements.
    x = jax.random.normal(kx, (1, BATCH, SIGNAL), jnp.float32)
    params = init_params(kp)

    # One-time parameter packing (hoisted out of the per-call path).
    wg, bg, wd, bd = prepare_encoder_params(params)

    y = encoder_forward(x, wg, bg, wd, bd)
    y = jax.block_until_ready(y)

    ref = reference_forward(x, params)
    assert y.shape == (1, BATCH, DENSE_OUT)
    assert jnp.allclose(y, ref, atol=1e-4, rtol=1e-4), float(jnp.max(jnp.abs(y - ref)))

    print("KERNEL_OK")
</pallas_src>

<mosaic_0001>
module attributes {stable_mosaic.version = 11 : i64} {
  func.func @encoder_kernel(%arg0: memref<24x24xf32, #tpu.memory_space<vmem>>, %arg1: memref<24x384xf32, #tpu.memory_space<vmem>>, %arg2: memref<1x384xf32, #tpu.memory_space<vmem>>, %arg3: memref<128x20xf32, #tpu.memory_space<vmem>>, %arg4: memref<1x20xf32, #tpu.memory_space<vmem>>, %arg5: memref<24x20xf32, #tpu.memory_space<vmem>>) attributes {dimension_semantics = [], scalar_prefetch = 0 : i64, scratch_operands = 0 : i64, tpu.core_type = #tpu.core_type<tc>} {
    %c0 = arith.constant 0 : index
    %c0_0 = arith.constant 0 : index
    %0 = vector.load %arg0[%c0, %c0_0] : memref<24x24xf32, #tpu.memory_space<vmem>>, vector<24x24xf32>
    %c0_1 = arith.constant 0 : index
    %c0_2 = arith.constant 0 : index
    %1 = vector.load %arg1[%c0_1, %c0_2] : memref<24x384xf32, #tpu.memory_space<vmem>>, vector<24x384xf32>
    %cst = arith.constant dense<0.000000e+00> : vector<24x384xf32>
    %2 = tpu.matmul %0, %1, %cst {dimension_numbers = #tpu.dot_dimension_numbers<[1], [0], [0], [1], [0, 0, 1, 1], [], []>} : vector<24x24xf32>, vector<24x384xf32>, vector<24x384xf32> -> vector<24x384xf32>
    %c0_3 = arith.constant 0 : index
    %c0_4 = arith.constant 0 : index
    %3 = vector.load %arg2[%c0_3, %c0_4] : memref<1x384xf32, #tpu.memory_space<vmem>>, vector<1x384xf32>
    %4 = vector.broadcast %3 : vector<1x384xf32> to vector<24x384xf32>
    %5 = arith.addf %2, %4 : vector<24x384xf32>
    %6 = vector.extract_strided_slice %5 {offsets = [0, 0], sizes = [24, 128], strides = [1, 1]} : vector<24x384xf32> to vector<24x128xf32>
    %7 = arith.negf %6 : vector<24x128xf32>
    %8 = math.exp %7 : vector<24x128xf32>
    %cst_5 = arith.constant 1.000000e+00 : f32
    %9 = vector.broadcast %cst_5 : f32 to vector<24x128xf32>
    %10 = arith.addf %9, %8 : vector<24x128xf32>
    %11 = arith.divf %9, %10 : vector<24x128xf32>
    %12 = vector.extract_strided_slice %5 {offsets = [0, 128], sizes = [24, 128], strides = [1, 1]} : vector<24x384xf32> to vector<24x128xf32>
    %13 = math.tanh %12 : vector<24x128xf32>
    %14 = vector.extract_strided_slice %5 {offsets = [0, 256], sizes = [24, 128], strides = [1, 1]} : vector<24x384xf32> to vector<24x128xf32>
    %15 = arith.negf %14 : vector<24x128xf32>
    %16 = math.exp %15 : vector<24x128xf32>
    %cst_6 = arith.constant 1.000000e+00 : f32
    %17 = vector.broadcast %cst_6 : f32 to vector<24x128xf32>
    %18 = arith.addf %17, %16 : vector<24x128xf32>
    %19 = arith.divf %17, %18 : vector<24x128xf32>
    %20 = arith.mulf %11, %13 : vector<24x128xf32>
    %21 = math.tanh %20 : vector<24x128xf32>
    %22 = arith.mulf %19, %21 : vector<24x128xf32>
    %c0_7 = arith.constant 0 : index
    %c0_8 = arith.constant 0 : index
    %23 = vector.load %arg3[%c0_7, %c0_8] : memref<128x20xf32, #tpu.memory_space<vmem>>, vector<128x20xf32>
    %cst_9 = arith.constant dense<0.000000e+00> : vector<24x20xf32>
    %24 = tpu.matmul %22, %23, %cst_9 {dimension_numbers = #tpu.dot_dimension_numbers<[1], [0], [0], [1], [0, 0, 1, 1], [], []>} : vector<24x128xf32>, vector<128x20xf32>, vector<24x20xf32> -> vector<24x20xf32>
    %c0_10 = arith.constant 0 : index
    %c0_11 = arith.constant 0 : index
    %25 = vector.load %arg4[%c0_10, %c0_11] : memref<1x20xf32, #tpu.memory_space<vmem>>, vector<1x20xf32>
    %26 = vector.broadcast %25 : vector<1x20xf32> to vector<24x20xf32>
    %27 = arith.addf %24, %26 : vector<24x20xf32>
    %c0_12 = arith.constant 0 : index
    %c0_13 = arith.constant 0 : index
    %28 = vector.load %arg5[%c0_12, %c0_13] : memref<24x20xf32, #tpu.memory_space<vmem>>, vector<24x20xf32>
    tpu.vector_store %arg5[%c0_12, %c0_13], %27 {strides = array<i32>} : memref<24x20xf32, #tpu.memory_space<vmem>>, vector<24x20xf32>,
    return
  }
}

</mosaic_0001>

<bundles_post_ra>
// kernel: encoder_forward.1
= control target key start
LH: loop header
LB: loop body
LE: loop exit
PB: predicated region body
PF: predicated region fallthrough
CT: control target
= control target key end

     0   :  { %v545_v3 = vmov 0.0   ;;  %v546_v4 = vmov 0.0|0.0   ;;  %vm547_vm0 = vmmov 0   ;;  %vm49_vm1 = vcmask 195584   ;;  %s708_s1 = inlined_call_operand.vmem [shape: f32[24,384], index: 1, kind: input, shape index: {}]   ;;  %s709_s0 = inlined_call_operand.vmem [shape: f32[24,24], index: 0, kind: input, shape index: {}]   ;;  %s710_s3 = inlined_call_operand.vmem [shape: f32[128,20], index: 3, kind: input, shape index: {}]   ;;  %s711_s2 = inlined_call_operand.vmem [shape: f32[1,384], index: 2, kind: input, shape index: {}]   ;;  %s712_s4 = inlined_call_operand.vmem [shape: f32[1,20], index: 4, kind: input, shape index: {}]   ;;  %s713_s5 = inlined_call_operand.vmem [shape: f32[24,20], index: 5, kind: output, shape index: {}]  }
   0x1   :  { %v24_v0 = vld [vmem:[%s708_s1 + $0x8] sm:$0xff]  ;;  %v27_v1 = vld [vmem:[%s708_s1 + $0x20] sm:$0xff]  ;;  %123 = vmatprep.mubr.f32.mxu1 %v545_v3  ;;  %482 = vmatprep.subr.bf16.mxu0 %v546_v4  ;;  %v26_v6 = vld [vmem:[%s708_s1 + $0x18] sm:$0xff]  ;;  %v34_v41 = vlaneseq  ;;  %vm373_vm2 = vcmask 162816  }
   0x2   :  { %v23_v2 = vld [vmem:[%s708_s1] sm:$0xff]  ;;  %v475_v5 = vpack.c.bf16 %v27_v1, %v24_v0  ;;  %466 = vmatprep.mubr.msk.f32.mxu0 %vm547_vm0, %v545_v3  ;;  %v30_v8 = vld [vmem:[%s708_s1 + $0x38] sm:$0xff]  ;;  %v25_v9 = vld [vmem:[%s708_s1 + $0x10] sm:$0xff] }
   0x3   :  { %v477_v7 = vpack.c.bf16 %v26_v6, %v23_v2  ;;  %v28_v10 = vld [vmem:[%s708_s1 + $0x28] sm:$0xff]  ;;  %v29_v11 = vld [vmem:[%s708_s1 + $0x30] sm:$0xff]  ;;  %v20_v12 = vld [vmem:[%s709_s0] sm:$0xff]  ;;  %v35_v42 = vshrl.u32 %v34_v41, 7 }
   0x4   :  { %476 = vmatprep.subr.bf16.mxu1 %v475_v5  ;;  %v480_v13 = vpack.c.bf16 %v28_v10, %v25_v9  ;;  %v21_v14 = vld [vmem:[%s709_s0 + $0x8] sm:$0xff]  ;;  %v31_v15 = vld [vmem:[%s708_s1 + $0x40] sm:$0xff]  ;;  %v22_v16 = vld [vmem:[%s709_s0 + $0x10] sm:$0xff] }
   0x5   :  { %478 = vmatpush1.bf16.msra.mxu1 %v477_v7  ;;  %v270_v17 = vld [vmem:[%s710_s3] sm:$0xff]  ;;  %v271_v18 = vld [vmem:[%s710_s3 + $0x8] sm:$0xff]  ;;  %v272_v20 = vld [vmem:[%s710_s3 + $0x10] sm:$0xff]  ;;  %v36_v43 = vsub.s32 0, %v35_v42  ;;  %v40_v50 = vsub.s32 1, %v35_v42  ;;  %v44_v54 = vsub.s32 2, %v35_v42 }
   0x6   :  { %63 = vmatprep.subr.mxu1 %v30_v8  ;;  %v483_v19 = vpack.c.bf16 %v271_v18, %v270_v17  ;;  %v273_v21 = vld [vmem:[%s710_s3 + $0x18] sm:$0xff]  ;;  %v274_v23 = vld [vmem:[%s710_s3 + $0x20] sm:$0xff]  ;;  %v275_v24 = vld [vmem:[%s710_s3 + $0x28] sm:$0xff] }
   0x7   :  { %v486_v22 = vpack.c.bf16 %v273_v21, %v272_v20  ;;  %v489_v25 = vpack.c.bf16 %v275_v24, %v274_v23  ;;  %v276_v26 = vld [vmem:[%s710_s3 + $0x30] sm:$0xff]  ;;  %v277_v27 = vld [vmem:[%s710_s3 + $0x38] sm:$0xff]  ;;  %v278_v29 = vld [vmem:[%s710_s3 + $0x40] sm:$0xff] }
   0x8   :  { %484 = vmatpush3.bf16.msra.mxu0 %v483_v19  ;;  %v492_v28 = vpack.c.bf16 %v277_v27, %v276_v26  ;;  %v279_v30 = vld [vmem:[%s710_s3 + $0x48] sm:$0xff]  ;;  %v280_v32 = vld [vmem:[%s710_s3 + $0x50] sm:$0xff]  ;;  %v281_v33 = vld [vmem:[%s710_s3 + $0x58] sm:$0xff] }
   0x9   :  { %64 = vmatpush1.msra.mxu1 %v29_v11  ;;  %485 = vmatprep.subr.bf16.mxu0 %v546_v4  ;;  %v495_v31 = vpack.c.bf16 %v279_v30, %v278_v29  ;;  %v498_v34 = vpack.c.bf16 %v281_v33, %v280_v32  ;;  %v282_v35 = vld [vmem:[%s710_s3 + $0x60] sm:$0xff]  ;;  %v283_v36 = vld [vmem:[%s710_s3 + $0x68] sm:$0xff]  ;;  %v284_v38 = vld [vmem:[%s710_s3 + $0x70] sm:$0xff] }
   0xa   :  { %381 = vmatmul.mubr.msk.f32.vlgmr.msra.gmra.mrb[0].mxu1 %vm49_vm1, %v20_v12  ;;  %479 = vmatprep.subr.bf16.mxu1 %v546_v4  ;;  %v501_v37 = vpack.c.bf16 %v283_v36, %v282_v35  ;;  %v285_v39 = vld [vmem:[%s710_s3 + $0x78] sm:$0xff]  ;;  %v32_v44 = vld [vmem:[%s711_s2] sm:$0x7] }
   0xb   :  { %481 = vmatpush3.bf16.msra.mxu1 %v480_v13  ;;  %129 = vmatprep.mubr.f32.mxu1 %v545_v3  ;;  %v504_v40 = vpack.c.bf16 %v285_v39, %v284_v38  ;;  %v37_v45 = vrot.slane %v32_v44, %v36_v43  ;;  %v41_v56 = vrot.slane %v32_v44, %v40_v50 }
   0xc   :  { %423 = vmatprep.subr.mxu1 %v545_v3  ;;  %487 = vmatpush3.bf16.msra.mxu0 %v486_v22  ;;  %v45_v60 = vrot.slane %v32_v44, %v44_v54  ;;  %v393_v44 = vld [vmem:[%s712_s4] ss:$0 sm:$0xff] }
   0xd   :  { %488 = vmatprep.subr.bf16.mxu0 %v546_v4 }
   0xe   :  { %382 = vmatmul.mubr.msk.f32.gmra.mrb[2].mxu1 %vm49_vm1, %v21_v14 }
   0xf   :  { %135 = vmatprep.mubr.f32.mxu1 %v545_v3  ;;  %424 = vmatpush3.msra.mxu1 %v31_v15 }
  0x10   :  { %490 = vmatpush3.bf16.msra.mxu0 %v489_v25 }
  0x11   :  { %491 = vmatprep.subr.bf16.mxu0 %v546_v4 }
  0x12   :  { %383 = vmatmul.mubr.msk.f32.gmra.mrb[4].mxu1 %vm49_vm1, %v22_v16 }
  0x13   :  { %425 = vmatprep.mubr.msk.f32.mxu1 %vm547_vm0, %v545_v3 }
  0x14   :  { %493 = vmatpush3.bf16.msra.mxu0 %v492_v28 }
  0x15   :  { %494 = vmatprep.subr.bf16.mxu0 %v546_v4 }
  0x16   :  { %426 = vmatmul.mubr.msk.f32.vlgmr.msra.gmra.mrb[6].mxu1 %vm49_vm1, %v20_v12 }
  0x17   :  { %428 = vmatprep.mubr.msk.f32.mxu1 %vm547_vm0, %v545_v3 }
  0x18   :  { %496 = vmatpush3.bf16.msra.mxu0 %v495_v31 }
  0x19   :  { %497 = vmatprep.subr.bf16.mxu0 %v546_v4 }
  0x1a   :  { %429 = vmatmul.mubr.msk.f32.gmra.mrb[8].mxu1 %vm49_vm1, %v21_v14 }
  0x1b   :  { %431 = vmatprep.mubr.msk.f32.mxu1 %vm547_vm0, %v545_v3 }
  0x1c   :  { %499 = vmatpush3.bf16.msra.mxu0 %v498_v34 }
  0x1d   :  { %500 = vmatprep.subr.bf16.mxu0 %v546_v4 }
  0x1e   :  { %432 = vmatmul.mubr.msk.f32.gmra.mrb[10].mxu1 %vm49_vm1, %v22_v16 }
  0x20   :  { %502 = vmatpush3.bf16.msra.mxu0 %v501_v37 }
  0x21   :  { %503 = vmatprep.subr.bf16.mxu0 %v546_v4 }
  0x24   :  { %505 = vmatpush3.bf16.msra.mxu0 %v504_v40 }
  0xdd   :  { %v125_v46 = vpop.f32.mrb[0].mxu1 }
  0xde   :  { %v126_v47 = vadd.f32 %v125_v46, %v37_v45  ;;  %v127_v48 = vpop.f32.mrb[1].mxu1 }
  0xdf   :  { %v128_v62 = vadd.f32 %v127_v48, %v41_v56 }
  0xe0   :  { %v387_v49 = vmul.f32 -1.442695, %v126_v47 }
  0xe1   :  { %v131_v51 = vpop.f32.mrb[2].mxu1 }
  0xe2   :  { %509 = vpow2.f32 %v387_v49  ;;  %v132_v52 = vadd.f32 %v131_v51, %v37_v45  ;;  %v133_v53 = vpop.f32.mrb[3].mxu1 }
  0xe3   :  { %v134_v6 = vadd.f32 %v133_v53, %v41_v56 }
  0xe4   :  { %v388_v55 = vmul.f32 -1.442695, %v132_v52 }
  0xe5   :  { %v137_v57 = vpop.f32.mrb[4].mxu1 }
  0xe6   :  { %511 = vpow2.f32 %v388_v55  ;;  %v138_v58 = vadd.f32 %v137_v57, %v37_v45  ;;  %v139_v59 = vpop.f32.mrb[5].mxu1 }
  0xe7   :  { %v140_v13 = vadd.f32 %v139_v59, %v41_v56 }
  0xe8   :  { %v389_v61 = vmul.f32 -1.442695, %v138_v58 }
  0xe9   :  { %v208_v63 = vpop.f32.mrb[6].mxu1 }
  0xea   :  { %513 = vpow2.f32 %v389_v61  ;;  %v209_v0 = vadd.f32 %v208_v63, %v45_v60  ;;  %v427_v1 = vpop.f32.mrb[7].mxu1 }
  0xeb   :  { %515 = vtanh.f32 %v128_v62 }
  0xec   :  { %v510_v2 = vpop.eup %509  ;;  %v390_v4 = vmul.f32 -1.442695, %v209_v0 }
  0xed   :  { %v231_v5 = vadd.f32 1.0, %v510_v2  ;;  %v213_v7 = vpop.f32.mrb[8].mxu1 }
  0xee   :  { %517 = vpow2.f32 %v390_v4  ;;  %v214_v8 = vadd.f32 %v213_v7, %v45_v60  ;;  %v430_v9 = vpop.f32.mrb[9].mxu1 }
  0xef   :  { %519 = vrcp.f32 %v231_v5 }
  0xf0   :  { %v512_v10 = vpop.eup %511  ;;  %v391_v11 = vmul.f32 -1.442695, %v214_v8  ;;  %521 = vtanh.f32 %v134_v6 }
  0xf1   :  { %v232_v12 = vadd.f32 1.0, %v512_v10  ;;  %v218_v14 = vpop.f32.mrb[10].mxu1 }
  0xf2   :  { %523 = vpow2.f32 %v391_v11  ;;  %v219_v15 = vadd.f32 %v218_v14, %v45_v60  ;;  %v433_v16 = vpop.f32.mrb[11].mxu1 }
  0xf3   :  { %525 = vrcp.f32 %v232_v12 }
  0xf4   :  { %v514_v17 = vpop.eup %513  ;;  %v392_v18 = vmul.f32 -1.442695, %v219_v15  ;;  %527 = vtanh.f32 %v140_v13 }
  0xf5   :  { %v233_v19 = vadd.f32 1.0, %v514_v17  ;;  %v516_v20 = vpop.eup %515 }
  0xf6   :  { %529 = vpow2.f32 %v392_v18 }
  0xf7   :  { %531 = vrcp.f32 %v233_v19 }
  0xf8   :  { %v518_v21 = vpop.eup %517 }
  0xf9   :  { %v520_v22 = vpop.eup %519  ;;  %v252_v23 = vadd.f32 1.0, %v518_v21 }
  0xfa   :  { %v261_v24 = vmul.f32 %v520_v22, %v516_v20  ;;  %v522_v25 = vpop.eup %521 }
  0xfb   :  { %533 = vrcp.f32 %v252_v23 }
  0xfc   :  { %v524_v26 = vpop.eup %523  ;;  %535 = vtanh.f32 %v261_v24 }
  0xfd   :  { %v526_v27 = vpop.eup %525  ;;  %v253_v28 = vadd.f32 1.0, %v524_v26 }
  0xfe   :  { %v262_v29 = vmul.f32 %v526_v27, %v522_v25  ;;  %v528_v30 = vpop.eup %527 }
  0xff   :  { %537 = vrcp.f32 %v253_v28 }
 0x100   :  { %v530_v31 = vpop.eup %529  ;;  %539 = vtanh.f32 %v262_v29 }
 0x101   :  { %v532_v32 = vpop.eup %531  ;;  %v254_v33 = vadd.f32 1.0, %v530_v31 }
 0x102   :  { %v263_v34 = vmul.f32 %v532_v32, %v528_v30 }
 0x103   :  { %541 = vrcp.f32 %v254_v33 }
 0x104   :  { %543 = vtanh.f32 %v263_v34 }
 0x105   :  { %v534_v35 = vpop.eup %533 }
 0x106   :  { %v536_v36 = vpop.eup %535 }
 0x107   :  { %v267_v37 = vmul.f32 %v536_v36, %v534_v35 }
 0x109   :  { %v538_v38 = vpop.eup %537  ;;  %467 = vmatmul.mubr.f32.vlgmr.msra.gmra.mrb[0].mxu0 %v267_v37 }
 0x10a   :  { %v540_v39 = vpop.eup %539  ;;  %469 = vmatprep.mubr.msk.f32.mxu0 %vm547_vm0, %v545_v3 }
 0x10b   :  { %v268_v40 = vmul.f32 %v540_v39, %v538_v38 }
 0x10d   :  { %v542_v41 = vpop.eup %541  ;;  %470 = vmatmul.mubr.f32.gmra.mrb[2].mxu0 %v268_v40 }
 0x10e   :  { %v544_v42 = vpop.eup %543  ;;  %472 = vmatprep.mubr.msk.f32.mxu0 %vm547_vm0, %v545_v3 }
 0x10f   :  { %v269_v43 = vmul.f32 %v544_v42, %v542_v41 }
 0x111   :  { %473 = vmatmul.mubr.f32.gmra.mrb[4].mxu0 %v269_v43 }
 0x1dc   :  { %v359_v45 = vpop.f32.mrb[0].mxu0 }
 0x1dd   :  { %v360_v46 = vadd.f32 %v393_v44, %v359_v45  ;;  %v468_v47 = vpop.f32.mrb[1].mxu0 }
 0x1df   :  { %374 = vst.msk [vmem:[%s713_s5] sm:$0xff] %vm373_vm2, %v360_v46 }
 0x1e0   :  { %v364_v48 = vpop.f32.mrb[2].mxu0 }
 0x1e1   :  { %v365_v49 = vadd.f32 %v393_v44, %v364_v48  ;;  %v471_v50 = vpop.f32.mrb[3].mxu0 }
 0x1e3   :  { %375 = vst.msk [vmem:[%s713_s5 + $0x8] sm:$0xff] %vm373_vm2, %v365_v49 }
 0x1e4   :  { %v369_v3 = vpop.f32.mrb[4].mxu0 }
 0x1e5   :  { %v370_v51 = vadd.f32 %v393_v44, %v369_v3  ;;  %v474_v52 = vpop.f32.mrb[5].mxu0 }
 0x1e7   :  { %376 = vst.msk [vmem:[%s713_s5 + $0x10] sm:$0xff] %vm373_vm2, %v370_v51 }

</bundles_post_ra>
